<compile_context>
chip_gen: v7x
topology: tpu7x:2x2x1
jax: 0.10.0
libtpu: 0.0.40
codegen_flags: <defaults>
</compile_context>

<pallas_src>
import functools

import jax
import jax.numpy as jnp
from jax.experimental import pallas as pl
from jax.experimental.pallas import tpu as pltpu

EPS = 0.8     # nn.BatchNorm2d(out_size, 0.8): second positional arg is eps
SLOPE = 0.2   # LeakyReLU negative slope

_VMEM_LIMIT = 48 * 1024 * 1024   # > 16/32 MiB default scoped, < v7x 64 MiB physical


def _round_up(x, m):
    return (x + m - 1) // m * m


def _conv_stats_kernel(patches_ref, w_ref, conv_ref, sum_ref, ssq_ref):
    """Phase 1: conv tile on the MXU (f32 accumulate) + per-tile per-channel stats."""
    conv = jnp.dot(patches_ref[...], w_ref[...],
                   preferred_element_type=jnp.float32)            # (tm, Cp) f32
    sum_ref[0] = jnp.sum(conv, axis=0, keepdims=True)             # (1, Cp) lane-dense
    ssq_ref[0] = jnp.sum(conv * conv, axis=0, keepdims=True)      # (1, Cp) lane-dense
    conv_ref[...] = conv.astype(conv_ref.dtype)                   # bf16 round-trip


def _bn_lrelu_kernel(conv_ref, a_ref, b_ref, out_ref):
    """Phase 2: folded-FMA batch-norm + LeakyReLU(0.2). Pure streaming epilogue."""
    y = conv_ref[...].astype(jnp.float32) * a_ref[...] + b_ref[...]
    out_ref[...] = jnp.where(y >= 0, y, SLOPE * y).astype(out_ref.dtype)


def _pick_tile(M, block_m):
    """Balanced M tile: multiple of 16 rows, >= 2 tiles when possible (v7x dual-TC)."""
    n_tiles = max(1, min(pl.cdiv(M, 16), max(2, pl.cdiv(M, block_m))))
    tm = _round_up(pl.cdiv(M, n_tiles), 16)
    Mp = _round_up(M, tm)
    return tm, Mp, Mp // tm


@functools.partial(jax.jit, static_argnames=("block_m",))
def unet_down(x_nchw, w_oihw, gamma, beta, *, block_m=512):
    """UnetDown forward. x: (N, Cin, H, W) f32, w: (Cout, Cin, 3, 3) f32."""
    N, Cin, H, W = x_nchw.shape
    Cout = w_oihw.shape[0]
    Ho = (H + 2 - 3) // 2 + 1
    Wo = (W + 2 - 3) // 2 + 1
    M, K = N * Ho * Wo, 9 * Cin

    # Lane/tile-aligned padded sizes (zero columns do not change the contraction).
    Kp = _round_up(K, 128)
    Cp = _round_up(Cout, 128)
    tm, Mp, gm = _pick_tile(M, block_m)

    # --- glue: cast bf16 FIRST, NCHW -> NHWC, pad, im2col, align (no arithmetic) ---
    x = jnp.transpose(x_nchw.astype(jnp.bfloat16), (0, 2, 3, 1))        # NHWC bf16
    xp = jnp.pad(x, ((0, 0), (1, 1), (1, 1), (0, 0)))
    cols = []
    for kh in range(3):
        for kw in range(3):
            cols.append(xp[:, kh:kh + 2 * Ho:2, kw:kw + 2 * Wo:2, :])   # (N,Ho,Wo,Cin)
    patches = jnp.stack(cols, axis=3).reshape(M, K)                     # (M, 9*Cin) bf16
    patches = jnp.pad(patches, ((0, Mp - M), (0, Kp - K)))
    wmat = jnp.transpose(w_oihw, (2, 3, 1, 0)).reshape(K, Cout)         # (kh,kw,Cin)->Cout
    wmat = jnp.pad(wmat, ((0, Kp - K), (0, Cp - Cout))).astype(jnp.bfloat16)
    gamma_p = jnp.pad(gamma.astype(jnp.float32), (0, Cp - Cout))
    beta_p = jnp.pad(beta.astype(jnp.float32), (0, Cp - Cout))

    # --- phase 1: conv (MXU, f32 acc) + per-tile per-channel partial sum / sumsq ---
    conv, sums, ssqs = pl.pallas_call(
        _conv_stats_kernel,
        grid=(gm,),
        in_specs=[
            pl.BlockSpec((tm, Kp), lambda i: (i, 0)),
            pl.BlockSpec((Kp, Cp), lambda i: (0, 0)),    # weights VMEM-resident
        ],
        out_specs=[
            pl.BlockSpec((tm, Cp), lambda i: (i, 0)),
            pl.BlockSpec((1, 1, Cp), lambda i: (i, 0, 0)),
            pl.BlockSpec((1, 1, Cp), lambda i: (i, 0, 0)),
        ],
        out_shape=[
            jax.ShapeDtypeStruct((Mp, Cp), jnp.bfloat16),
            jax.ShapeDtypeStruct((gm, 1, Cp), jnp.float32),
            jax.ShapeDtypeStruct((gm, 1, Cp), jnp.float32),
        ],
        compiler_params=pltpu.CompilerParams(
            dimension_semantics=("parallel",),
            vmem_limit_bytes=_VMEM_LIMIT),
        cost_estimate=pl.CostEstimate(
            flops=2 * Mp * Kp * Cp + 3 * Mp * Cp,
            transcendentals=0,
            bytes_accessed=Mp * Kp * 2 + Kp * Cp * 2 + Mp * Cp * 2 + 2 * gm * Cp * 4),
    )(patches, wmat)

    # --- BN fold (tiny, per-channel, done once): a = gamma*rsqrt(var+eps), b = beta-mean*a
    inv_m = 1.0 / M
    mean = jnp.sum(sums, axis=(0, 1)) * inv_m                            # (Cp,)
    var = jnp.maximum(jnp.sum(ssqs, axis=(0, 1)) * inv_m - mean * mean, 0.0)
    a_vec = gamma_p * jax.lax.rsqrt(var + EPS)
    b_vec = beta_p - mean * a_vec
    a = a_vec.reshape(1, Cp)
    b = b_vec.reshape(1, Cp)

    # --- phase 2: streaming y = a*conv + b + LeakyReLU; output aliases conv buffer ---
    out_flat = pl.pallas_call(
        _bn_lrelu_kernel,
        grid=(gm,),
        in_specs=[
            pl.BlockSpec((tm, Cp), lambda i: (i, 0)),
            pl.BlockSpec((1, Cp), lambda i: (0, 0)),
            pl.BlockSpec((1, Cp), lambda i: (0, 0)),
        ],
        out_specs=pl.BlockSpec((tm, Cp), lambda i: (i, 0)),
        out_shape=jax.ShapeDtypeStruct((Mp, Cp), jnp.bfloat16),
        input_output_aliases={0: 0},                      # conv is dead after this call
        compiler_params=pltpu.CompilerParams(
            dimension_semantics=("parallel",),
            vmem_limit_bytes=_VMEM_LIMIT),
        cost_estimate=pl.CostEstimate(
            flops=4 * Mp * Cp,
            transcendentals=0,
            bytes_accessed=2 * Mp * Cp * 2 + 2 * Cp * 4),
    )(conv, a, b)

    # --- glue: strip padding, back to NCHW f32 ---
    out = out_flat[:M, :Cout].astype(jnp.float32).reshape(N, Ho, Wo, Cout)
    return jnp.transpose(out, (0, 3, 1, 2))


def _reference(x_nchw, w_oihw, gamma, beta):
    conv = jax.lax.conv_general_dilated(
        x_nchw, w_oihw, window_strides=(2, 2), padding=((1, 1), (1, 1)),
        dimension_numbers=("NCHW", "OIHW", "NCHW"))
    mean = conv.mean(axis=(0, 2, 3), keepdims=True)
    var = ((conv - mean) ** 2).mean(axis=(0, 2, 3), keepdims=True)
    xhat = (conv - mean) / jnp.sqrt(var + EPS)
    y = xhat * gamma.reshape(1, -1, 1, 1) + beta.reshape(1, -1, 1, 1)
    return jnp.where(y >= 0, y, SLOPE * y)


if __name__ == "__main__":
    N, Cin, H, W = 2, 4, 16, 16
    Cout = 8

    key = jax.random.PRNGKey(0)
    kx, kw, kg, kb = jax.random.split(key, 4)
    x = jax.random.normal(kx, (N, Cin, H, W), dtype=jnp.float32)
    w = 0.1 * jax.random.normal(kw, (Cout, Cin, 3, 3), dtype=jnp.float32)
    gamma = 1.0 + 0.1 * jax.random.normal(kg, (Cout,), dtype=jnp.float32)
    beta = 0.1 * jax.random.normal(kb, (Cout,), dtype=jnp.float32)

    out = unet_down(x, w, gamma, beta)
    jax.block_until_ready(out)

    ref = _reference(x, w, gamma, beta)
    assert out.shape == (N, Cout, H // 2, W // 2), out.shape
    # bf16 MXU inputs + bf16 conv round-trip -> ~1e-2 agreement vs f32 reference
    assert jnp.allclose(out, ref, rtol=3e-2, atol=3e-2), float(jnp.abs(out - ref).max())

    print("KERNEL_OK")
</pallas_src>

<mosaic_0001>
module attributes {stable_mosaic.version = 11 : i64} {
  func.func @_conv_stats_kernel(%arg0: i32, %arg1: memref<64x128xbf16, #tpu.memory_space<vmem>>, %arg2: memref<128x128xbf16, #tpu.memory_space<vmem>>, %arg3: memref<64x128xbf16, #tpu.memory_space<vmem>>, %arg4: memref<1x1x128xf32, #tpu.memory_space<vmem>>, %arg5: memref<1x1x128xf32, #tpu.memory_space<vmem>>) attributes {dimension_semantics = [#tpu.dimension_semantics<parallel>], iteration_bounds = array<i64: 2>, scalar_prefetch = 0 : i64, scratch_operands = 0 : i64, tpu.core_type = #tpu.core_type<tc>, window_params = [{transform_indices = @transform_0, window_bounds = array<i64: 64, 128>}, {pipeline_mode = #tpu.pipeline_mode<synchronous>, transform_indices = @transform_1, window_bounds = array<i64: 128, 128>}, {transform_indices = @transform_2, window_bounds = array<i64: 64, 128>}, {transform_indices = @transform_3, window_bounds = array<i64: 1, 1, 128>}, {transform_indices = @transform_4, window_bounds = array<i64: 1, 1, 128>}]} {
    %c0 = arith.constant 0 : index
    %c0_0 = arith.constant 0 : index
    %0 = vector.load %arg1[%c0, %c0_0] : memref<64x128xbf16, #tpu.memory_space<vmem>>, vector<64x128xbf16>
    %c0_1 = arith.constant 0 : index
    %c0_2 = arith.constant 0 : index
    %1 = vector.load %arg2[%c0_1, %c0_2] : memref<128x128xbf16, #tpu.memory_space<vmem>>, vector<128x128xbf16>
    %cst = arith.constant dense<0.000000e+00> : vector<64x128xf32>
    %2 = tpu.matmul %0, %1, %cst {dimension_numbers = #tpu.dot_dimension_numbers<[1], [0], [0], [1], [0, 0, 1, 1], [], []>} : vector<64x128xbf16>, vector<128x128xbf16>, vector<64x128xf32> -> vector<64x128xf32>
    %cst_3 = arith.constant dense<0.000000e+00> : vector<128xf32>
    %3 = vector.multi_reduction <add>, %2, %cst_3 [0] : vector<64x128xf32> to vector<128xf32>
    %4 = vector.shape_cast %3 : vector<128xf32> to vector<1x128xf32>
    %c0_4 = arith.constant 0 : index
    %c0_5 = arith.constant 0 : index
    %c0_6 = arith.constant 0 : index
    %5 = vector.load %arg4[%c0_4, %c0_5, %c0_6] : memref<1x1x128xf32, #tpu.memory_space<vmem>>, vector<1x1x128xf32>
    %6 = vector.shape_cast %5 : vector<1x1x128xf32> to vector<1x128xf32>
    %7 = vector.shape_cast %4 : vector<1x128xf32> to vector<1x1x128xf32>
    tpu.vector_store %arg4[%c0_4, %c0_5, %c0_6], %7 {strides = array<i32>} : memref<1x1x128xf32, #tpu.memory_space<vmem>>, vector<1x1x128xf32>,
    %8 = arith.mulf %2, %2 : vector<64x128xf32>
    %cst_7 = arith.constant dense<0.000000e+00> : vector<128xf32>
    %9 = vector.multi_reduction <add>, %8, %cst_7 [0] : vector<64x128xf32> to vector<128xf32>
    %10 = vector.shape_cast %9 : vector<128xf32> to vector<1x128xf32>
    %c0_8 = arith.constant 0 : index
    %c0_9 = arith.constant 0 : index
    %c0_10 = arith.constant 0 : index
    %11 = vector.load %arg5[%c0_8, %c0_9, %c0_10] : memref<1x1x128xf32, #tpu.memory_space<vmem>>, vector<1x1x128xf32>
    %12 = vector.shape_cast %11 : vector<1x1x128xf32> to vector<1x128xf32>
    %13 = vector.shape_cast %10 : vector<1x128xf32> to vector<1x1x128xf32>
    tpu.vector_store %arg5[%c0_8, %c0_9, %c0_10], %13 {strides = array<i32>} : memref<1x1x128xf32, #tpu.memory_space<vmem>>, vector<1x1x128xf32>,
    %14 = arith.truncf %2 : vector<64x128xf32> to vector<64x128xbf16>
    %c0_11 = arith.constant 0 : index
    %c0_12 = arith.constant 0 : index
    %15 = vector.load %arg3[%c0_11, %c0_12] : memref<64x128xbf16, #tpu.memory_space<vmem>>, vector<64x128xbf16>
    tpu.vector_store %arg3[%c0_11, %c0_12], %14 {strides = array<i32>} : memref<64x128xbf16, #tpu.memory_space<vmem>>, vector<64x128xbf16>,
    return
  }
  func.func @transform_0(%arg0: i32) -> (i32, i32) {
    %c0_i32 = arith.constant 0 : i32
    %c0_i32_0 = arith.constant 0 : i32
    return %arg0, %c0_i32 : i32, i32
  }
  func.func @transform_1(%arg0: i32) -> (i32, i32) {
    %c0_i32 = arith.constant 0 : i32
    %c0_i32_0 = arith.constant 0 : i32
    %c0_i32_1 = arith.constant 0 : i32
    return %c0_i32, %c0_i32_0 : i32, i32
  }
  func.func @transform_2(%arg0: i32) -> (i32, i32) {
    %c0_i32 = arith.constant 0 : i32
    %c0_i32_0 = arith.constant 0 : i32
    return %arg0, %c0_i32 : i32, i32
  }
  func.func @transform_3(%arg0: i32) -> (i32, i32, i32) {
    %c0_i32 = arith.constant 0 : i32
    %c0_i32_0 = arith.constant 0 : i32
    %c0_i32_1 = arith.constant 0 : i32
    return %arg0, %c0_i32, %c0_i32_0 : i32, i32, i32
  }
  func.func @transform_4(%arg0: i32) -> (i32, i32, i32) {
    %c0_i32 = arith.constant 0 : i32
    %c0_i32_0 = arith.constant 0 : i32
    %c0_i32_1 = arith.constant 0 : i32
    return %arg0, %c0_i32, %c0_i32_0 : i32, i32, i32
  }
}

module attributes {stable_mosaic.version = 11 : i64} {
  func.func @_bn_lrelu_kernel(%arg0: i32, %arg1: memref<64x128xbf16, #tpu.memory_space<vmem>>, %arg2: memref<1x128xf32, #tpu.memory_space<vmem>>, %arg3: memref<1x128xf32, #tpu.memory_space<vmem>>, %arg4: memref<64x128xbf16, #tpu.memory_space<vmem>>) attributes {dimension_semantics = [#tpu.dimension_semantics<parallel>], iteration_bounds = array<i64: 2>, scalar_prefetch = 0 : i64, scratch_operands = 0 : i64, tpu.core_type = #tpu.core_type<tc>, window_params = [{transform_indices = @transform_0, window_bounds = array<i64: 64, 128>}, {pipeline_mode = #tpu.pipeline_mode<synchronous>, transform_indices = @transform_1, window_bounds = array<i64: 1, 128>}, {pipeline_mode = #tpu.pipeline_mode<synchronous>, transform_indices = @transform_2, window_bounds = array<i64: 1, 128>}, {transform_indices = @transform_3, window_bounds = array<i64: 64, 128>}]} {
    %c0 = arith.constant 0 : index
    %c0_0 = arith.constant 0 : index
    %0 = vector.load %arg1[%c0, %c0_0] : memref<64x128xbf16, #tpu.memory_space<vmem>>, vector<64x128xbf16>
    %1 = arith.extf %0 : vector<64x128xbf16> to vector<64x128xf32>
    %c0_1 = arith.constant 0 : index
    %c0_2 = arith.constant 0 : index
    %2 = vector.load %arg2[%c0_1, %c0_2] : memref<1x128xf32, #tpu.memory_space<vmem>>, vector<1x128xf32>
    %3 = vector.broadcast %2 : vector<1x128xf32> to vector<64x128xf32>
    %4 = arith.mulf %1, %3 : vector<64x128xf32>
    %c0_3 = arith.constant 0 : index
    %c0_4 = arith.constant 0 : index
    %5 = vector.load %arg3[%c0_3, %c0_4] : memref<1x128xf32, #tpu.memory_space<vmem>>, vector<1x128xf32>
    %6 = vector.broadcast %5 : vector<1x128xf32> to vector<64x128xf32>
    %7 = arith.addf %4, %6 : vector<64x128xf32>
    %cst = arith.constant 0.000000e+00 : f32
    %8 = vector.broadcast %cst : f32 to vector<64x128xf32>
    %9 = arith.cmpf oge, %7, %8 : vector<64x128xf32>
    %cst_5 = arith.constant 2.000000e-01 : f32
    %10 = vector.broadcast %cst_5 : f32 to vector<64x128xf32>
    %11 = arith.mulf %10, %7 : vector<64x128xf32>
    %12 = arith.select %9, %7, %11 : vector<64x128xi1>, vector<64x128xf32>
    %13 = arith.truncf %12 : vector<64x128xf32> to vector<64x128xbf16>
    %c0_6 = arith.constant 0 : index
    %c0_7 = arith.constant 0 : index
    %14 = vector.load %arg4[%c0_6, %c0_7] : memref<64x128xbf16, #tpu.memory_space<vmem>>, vector<64x128xbf16>
    tpu.vector_store %arg4[%c0_6, %c0_7], %13 {strides = array<i32>} : memref<64x128xbf16, #tpu.memory_space<vmem>>, vector<64x128xbf16>,
    return
  }
  func.func @transform_0(%arg0: i32) -> (i32, i32) {
    %c0_i32 = arith.constant 0 : i32
    %c0_i32_0 = arith.constant 0 : i32
    return %arg0, %c0_i32 : i32, i32
  }
  func.func @transform_1(%arg0: i32) -> (i32, i32) {
    %c0_i32 = arith.constant 0 : i32
    %c0_i32_0 = arith.constant 0 : i32
    %c0_i32_1 = arith.constant 0 : i32
    return %c0_i32, %c0_i32_0 : i32, i32
  }
  func.func @transform_2(%arg0: i32) -> (i32, i32) {
    %c0_i32 = arith.constant 0 : i32
    %c0_i32_0 = arith.constant 0 : i32
    %c0_i32_1 = arith.constant 0 : i32
    return %c0_i32, %c0_i32_0 : i32, i32
  }
  func.func @transform_3(%arg0: i32) -> (i32, i32) {
    %c0_i32 = arith.constant 0 : i32
    %c0_i32_0 = arith.constant 0 : i32
    return %arg0, %c0_i32 : i32, i32
  }
}

</mosaic_0001>

<bundles_post_ra>
// kernel: unet_down.2
= control target key start
LH: loop header
LB: loop body
LE: loop exit
PB: predicated region body
PF: predicated region fallthrough
CT: control target
= control target key end

     0   :  { %s729_s15 = smov 0   ;;  %s794_s0 = inlined_call_operand.vmem [shape: bf16[128,128], index: 0, kind: input, shape index: {}]   ;;  %s795_s1 = inlined_call_operand.vmem [shape: bf16[128,128], index: 1, kind: input, shape index: {}]   ;;  %s796_s2 = inlined_call_operand.vmem [shape: bf16[128,128], index: 2, kind: output, shape index: {0}]   ;;  %s797_s3 = inlined_call_operand.vmem [shape: f32[2,1,128], index: 3, kind: output, shape index: {1}]   ;;  %s798_s4 = inlined_call_operand.vmem [shape: f32[2,1,128], index: 4, kind: output, shape index: {2}]  }
   0x1 LB: > { %s735_s16 = sadd.s32 4294967295, %s702_s15   ;;  %p566_p0 = scmp.ge.s32.totalorder %s702_s15, 1  ;;  %s702_s15 = sphi %s729_s15, %s15_s15  }
   0x2   : > { %p168_p1 = scmp.lt.s32.totalorder %s702_s15, 3 }
   0x4   : > { %p169_p2 = pnand %p566_p0, %p168_p1 }
   0x5   : > { %v684_v0 = vld [vmem:[%s795_s1] sm:$0xff] (!%p169_p2)   ;;  %s567_s19 = sshll.u32 (!%p169_p2), %s735_s16, 3  ;;  %v685_v1 = vld [vmem:[%s795_s1 + $0x8] sm:$0xff] (!%p169_p2)   ;;  %v686_v2 = vld [vmem:[%s795_s1 + $0x10] sm:$0xff] (!%p169_p2)   ;;  %p212_p4 = scmp.lt.s32.totalorder (!%p169_p2), %s735_s16, 1 }
   0x6   : > { %172 = sbr.rel (%p169_p2) target bundleno = 282 (0x11a), region = 28  ;;  %p201_p3 = scmp.lt.s32.totalorder (!%p169_p2), %s567_s19, 15  ;;  %636 = vmatprep.subr.bf16.mxu0 (!%p169_p2), %v684_v0  ;;  %660 = vmatprep.subr.bf16.mxu1 (!%p169_p2), %v684_v0  ;;  %v687_v3 = vld [vmem:[%s795_s1 + $0x18] sm:$0xff] (!%p169_p2)   ;;  %v688_v6 = vld [vmem:[%s795_s1 + $0x20] sm:$0xff] (!%p169_p2)   ;;  %v689_v7 = vld [vmem:[%s795_s1 + $0x28] sm:$0xff] (!%p169_p2)  }
   0x7   : > { %637 = vmatpush3.bf16.msra.mxu0 (!%p169_p2), %v684_v0  ;;  %668 = vmatpush3.bf16.msra.mxu1 (!%p169_p2), %v684_v0  ;;  %v690_v8 = vld [vmem:[%s795_s1 + $0x30] sm:$0xff] (!%p169_p2)   ;;  %v691_v9 = vld [vmem:[%s795_s1 + $0x38] sm:$0xff] (!%p169_p2)  }
   0x8   : > { %638 = vmatprep.subr.bf16.mxu0 (!%p169_p2), %v685_v1  ;;  %661 = vmatprep.subr.bf16.mxu1 (!%p169_p2), %v685_v1 }
   0xb   : > { %639 = vmatpush3.bf16.msra.mxu0 (!%p169_p2), %v685_v1  ;;  %669 = vmatpush3.bf16.msra.mxu1 (!%p169_p2), %v685_v1 }
   0xc   : > { %640 = vmatprep.subr.bf16.mxu0 (!%p169_p2), %v686_v2  ;;  %662 = vmatprep.subr.bf16.mxu1 (!%p169_p2), %v686_v2 }
   0xd   : > { %s800_s19 = smov (!%p201_p3, %s567_s19), 15  ;;  %s802_s16 = smov (!%p212_p4, %s735_s16), 1 }
   0xe   : > { %s568_s24 = sshll.u32 %s800_s19, 2  ;;  %s214_s19 = scalar_lea.vmem %s797_s3, %s802_s16 }
   0xf   : > { %s757_s27 = scalar_lea.vmem %s794_s0, %s568_s24  ;;  %641 = vmatpush3.bf16.msra.mxu0 %v686_v2  ;;  %670 = vmatpush3.bf16.msra.mxu1 %v686_v2  ;;  %s210_s14 = scalar_lea.vmem %s796_s2, %s568_s24 }
  0x10   : > { %v692_v4 = vld [vmem:[%s757_s27] sm:$0xff]   ;;  %v694_v5 = vld [vmem:[%s757_s27 + $0x10] sm:$0xff]   ;;  %642 = vmatprep.subr.bf16.mxu0 %v687_v3  ;;  %663 = vmatprep.subr.bf16.mxu1 %v687_v3  ;;  %v693_v10 = vld [vmem:[%s757_s27 + $0x8] sm:$0xff]   ;;  %s217_s22 = scalar_lea.vmem %s798_s4, %s802_s16 }
  0x11   : > { %652 = vmatprep.mubr.bf16.mxu0 %v692_v4  ;;  %656 = vmatprep.mubr.bf16.mxu1 %v694_v5  ;;  %v695_v11 = vld [vmem:[%s757_s27 + $0x18] sm:$0xff]  }
  0x13   : > { %643 = vmatpush3.bf16.msra.mxu0 %v687_v3  ;;  %671 = vmatpush3.bf16.msra.mxu1 %v687_v3 }
  0x14   : > { %644 = vmatprep.subr.bf16.mxu0 %v688_v6  ;;  %664 = vmatprep.subr.bf16.mxu1 %v688_v6 }
  0x17   : > { %645 = vmatpush3.bf16.msra.mxu0 %v688_v6  ;;  %672 = vmatpush3.bf16.msra.mxu1 %v688_v6 }
  0x18   : > { %646 = vmatprep.subr.bf16.mxu0 %v689_v7  ;;  %665 = vmatprep.subr.bf16.mxu1 %v689_v7 }
  0x1b   : > { %647 = vmatpush3.bf16.msra.mxu0 %v689_v7  ;;  %673 = vmatpush3.bf16.msra.mxu1 %v689_v7 }
  0x1c   : > { %648 = vmatprep.subr.bf16.mxu0 %v690_v8  ;;  %666 = vmatprep.subr.bf16.mxu1 %v690_v8 }
  0x1f   : > { %649 = vmatpush3.bf16.msra.mxu0 %v690_v8  ;;  %674 = vmatpush3.bf16.msra.mxu1 %v690_v8 }
  0x20   : > { %650 = vmatprep.subr.bf16.mxu0 %v691_v9  ;;  %667 = vmatprep.subr.bf16.mxu1 %v691_v9 }
  0x23   : > { %651 = vmatpush3.bf16.msra.mxu0 %v691_v9  ;;  %675 = vmatpush3.bf16.msra.mxu1 %v691_v9 }
  0x26   : > { %653 = vmatmul.mubr.bf16.vlgmr.msra.gmra.mrb[0].mxu0 %v693_v10  ;;  %657 = vmatmul.mubr.bf16.vlgmr.msra.gmra.mrb[0].mxu1 %v695_v11 }
  0xf9   : > { %v654_v12 = vpop.f32.mrb[0].mxu0  ;;  %v658_v13 = vpop.f32.mrb[0].mxu1 }
  0xfa   : > { %v349_v14 = vpop.f32.mrb[1].mxu0  ;;  %v365_v15 = vpop.f32.mrb[1].mxu1  ;;  %v396_v27 = vmul.f32 %v654_v12, %v654_v12  ;;  %v400_v39 = vmul.f32 %v658_v13, %v658_v13 }
  0xfb   : > { %v655_v16 = vpop.f32.mrb[2].mxu0  ;;  %v659_v17 = vpop.f32.mrb[2].mxu1  ;;  %v394_v22 = vmul.f32 %v349_v14, %v349_v14  ;;  %v398_v33 = vmul.f32 %v365_v15, %v365_v15 }
  0xfc   : > { %v609_v18 = vpack.c.bf16 %v655_v16, %v654_v12  ;;  %v352_v19 = vpop.f32.mrb[3].mxu0  ;;  %v619_v20 = vpack.c.bf16 %v659_v17, %v658_v13  ;;  %v368_v21 = vpop.f32.mrb[3].mxu1  ;;  %v397_v30 = vmul.f32 %v655_v16, %v655_v16  ;;  %v401_v42 = vmul.f32 %v659_v17, %v659_v17 }
  0xfd   : > { %v380_v23 = vadd.f32 %v352_v19, %v349_v14  ;;  %v395_v24 = vmul.f32 %v352_v19, %v352_v19  ;;  %v604_v25 = vpack.c.bf16 %v352_v19, %v349_v14  ;;  %v614_v26 = vpack.c.bf16 %v368_v21, %v365_v15 }
  0xfe   : > { %621 = vst [vmem:[%s210_s14 + $0x8] sm:$0xff] %v609_v18   ;;  %623 = vst [vmem:[%s210_s14 + $0x18] sm:$0xff] %v619_v20   ;;  %v399_v38 = vmul.f32 %v368_v21, %v368_v21 }
  0xff   : > { %v381_v28 = vadd.f32 %v654_v12, %v380_v23  ;;  %v402_v29 = vadd.f32 %v395_v24, %v394_v22  ;;  %605 = vst [vmem:[%s210_s14] sm:$0xff] %v604_v25   ;;  %622 = vst [vmem:[%s210_s14 + $0x10] sm:$0xff] %v614_v26  }
 0x101   : > { %v403_v31 = vadd.f32 %v402_v29, %v396_v27  ;;  %v382_v32 = vadd.f32 %v655_v16, %v381_v28 }
 0x103   : > { %v383_v34 = vadd.f32 %v382_v32, %v365_v15  ;;  %v404_v35 = vadd.f32 %v403_v31, %v397_v30 }
 0x105   : > { %v405_v36 = vadd.f32 %v404_v35, %v398_v33  ;;  %v384_v37 = vadd.f32 %v383_v34, %v368_v21 }
 0x107   : > { %v385_v40 = vadd.f32 %v658_v13, %v384_v37  ;;  %v406_v41 = vadd.f32 %v405_v36, %v399_v38 }
 0x109   : > { %v386_v43 = vadd.f32 %v659_v17, %v385_v40  ;;  %v407_v44 = vadd.f32 %v406_v41, %v400_v39 }
 0x10b   : > { %v387_v45 = vrot.slane %v386_v43, 4  ;;  %v408_v46 = vadd.f32 %v407_v44, %v401_v42 }
 0x10d   : > { %v388_v47 = vadd.f32 %v387_v45, %v386_v43  ;;  %v409_v48 = vrot.slane %v408_v46, 4 }
 0x10f   : > { %v389_v49 = vrot.slane %v388_v47, 2  ;;  %v410_v50 = vadd.f32 %v409_v48, %v408_v46 }
 0x111   : > { %v390_v51 = vadd.f32 %v389_v49, %v388_v47  ;;  %v411_v52 = vrot.slane %v410_v50, 2 }
 0x113   : > { %v391_v53 = vrot.slane %v390_v51, 1  ;;  %v412_v54 = vadd.f32 %v411_v52, %v410_v50 }
 0x115   : > { %v392_v55 = vadd.f32 %v391_v53, %v390_v51  ;;  %v413_v56 = vrot.slane %v412_v54, 1 }
 0x117   : > { %393 = vst [vmem:[%s214_s19] sm:$0x1] %v392_v55  ;;  %v414_v57 = vadd.f32 %v413_v56, %v412_v54 }
 0x119   : > { %415 = vst [vmem:[%s217_s22] sm:$0x1] %v414_v57 }
 0x11a PF: > { %s15_s15 = sadd.s32 1, %s702_s15  }
 0x11b   : > { %p12_p5 = scmp.ge.s32.totalorder %s15_s15, 4  }
 0x11d   :  { %14 = sbr.rel (!%p12_p5) target bundleno = 1 (0x1), region = 82 }

// kernel: unet_down.3
= control target key start
LH: loop header
LB: loop body
LE: loop exit
PB: predicated region body
PF: predicated region fallthrough
CT: control target
= control target key end

     0   :  { %s447_s12 = smov 0   ;;  %s477_s0 = inlined_call_operand.vmem [shape: bf16[128,128], index: 0, kind: input, shape index: {}, may-alias: {0,3}]   ;;  %s478_s1 = inlined_call_operand.vmem [shape: f32[1,128], index: 1, kind: input, shape index: {}]   ;;  %s479_s2 = inlined_call_operand.vmem [shape: f32[1,128], index: 2, kind: input, shape index: {}]   ;;  %s480_s3 = inlined_call_operand.vmem [shape: bf16[128,128], index: 3, kind: output, shape index: {}, may-alias: {0,3}]  }
   0x1 LB: > { %s340_s13 = sadd.s32 4294967295, %s425_s12   ;;  %p344_p0 = scmp.ge.s32.totalorder %s425_s12, 1  ;;  %s425_s12 = sphi %s447_s12, %s13_s12  }
   0x2   : > { %p138_p1 = scmp.lt.s32.totalorder %s425_s12, 3 }
   0x4   : > { %p139_p2 = pnand %p344_p0, %p138_p1 }
   0x5   : > { %s345_s14 = sshll.u32 (!%p139_p2), %s340_s13, 3  ;;  %v349_v0 = vld [vmem:[%s478_s1] ss:$0 sm:$0xff] (!%p139_p2) }
   0x6   : > { %142 = sbr.rel (%p139_p2) target bundleno = 34 (0x22), region = 32  ;;  %p163_p3 = scmp.lt.s32.totalorder (!%p139_p2), %s345_s14, 15  ;;  %v350_v13 = vld [vmem:[%s479_s2] ss:$0 sm:$0xff] (!%p139_p2) }
   0xd   : > { %s482_s14 = smov (!%p163_p3, %s345_s14), 15 }
   0xe   : > { %s346_s15 = sshll.u32 %s482_s14, 2 }
   0xf   : > { %s166_s18 = scalar_lea.vmem %s477_s0, %s346_s15  ;;  %s172_s25 = scalar_lea.vmem %s480_s3, %s346_s15 }
  0x10   : > { %v370_v1 = vld [vmem:[%s166_s18] sm:$0xff]   ;;  %v405_v2 = vld [vmem:[%s166_s18 + $0x8] sm:$0xff]   ;;  %v406_v3 = vld [vmem:[%s166_s18 + $0x10] sm:$0xff]  }
  0x11   : > { %v371_v4 = vunpack.c.l.bf16 %v370_v1  ;;  %v372_v5 = vunpack.c.h.bf16 %v370_v1  ;;  %v375_v6 = vunpack.c.l.bf16 %v405_v2  ;;  %v376_v7 = vunpack.c.h.bf16 %v405_v2  ;;  %v407_v8 = vld [vmem:[%s166_s18 + $0x18] sm:$0xff]  }
  0x12   : > { %v379_v9 = vunpack.c.l.bf16 %v406_v3  ;;  %v380_v10 = vunpack.c.h.bf16 %v406_v3  ;;  %v383_v11 = vunpack.c.l.bf16 %v407_v8  ;;  %v384_v12 = vunpack.c.h.bf16 %v407_v8 }
  0x13   : > { %v197_v14 = vmul.f32 %v371_v4, %v349_v0  ;;  %v198_v15 = vmul.f32 %v372_v5, %v349_v0  ;;  %v199_v16 = vmul.f32 %v375_v6, %v349_v0  ;;  %v200_v17 = vmul.f32 %v376_v7, %v349_v0 }
  0x14   : > { %v201_v18 = vmul.f32 %v379_v9, %v349_v0  ;;  %v202_v19 = vmul.f32 %v380_v10, %v349_v0  ;;  %v203_v20 = vmul.f32 %v383_v11, %v349_v0  ;;  %v204_v21 = vmul.f32 %v384_v12, %v349_v0 }
  0x15   : > { %v212_v22 = vadd.f32 %v350_v13, %v197_v14  ;;  %v213_v23 = vadd.f32 %v350_v13, %v198_v15  ;;  %v214_v24 = vadd.f32 %v350_v13, %v199_v16  ;;  %v215_v25 = vadd.f32 %v350_v13, %v200_v17 }
  0x16   : > { %v216_v26 = vadd.f32 %v350_v13, %v201_v18  ;;  %v217_v27 = vadd.f32 %v350_v13, %v202_v19  ;;  %v218_v28 = vadd.f32 %v350_v13, %v203_v20  ;;  %v219_v29 = vadd.f32 %v350_v13, %v204_v21 }
  0x17   : > { %vm220_vm0 = vcmp.ge.f32.partialorder %v212_v22, 0.0  ;;  %vm221_vm1 = vcmp.ge.f32.partialorder %v213_v23, 0.0  ;;  %v228_v30 = vmul.f32 0.2, %v212_v22  ;;  %v229_v31 = vmul.f32 0.2, %v213_v23 }
  0x18   : > { %vm222_vm2 = vcmp.ge.f32.partialorder %v214_v24, 0.0  ;;  %vm223_vm3 = vcmp.ge.f32.partialorder %v215_v25, 0.0  ;;  %v230_v32 = vmul.f32 0.2, %v214_v24  ;;  %v231_v33 = vmul.f32 0.2, %v215_v25 }
  0x19   : > { %v236_v34 = vsel %vm220_vm0, %v212_v22, %v228_v30  ;;  %v237_v35 = vsel %vm221_vm1, %v213_v23, %v229_v31  ;;  %vm224_vm4 = vcmp.ge.f32.partialorder %v216_v26, 0.0  ;;  %vm225_vm5 = vcmp.ge.f32.partialorder %v217_v27, 0.0 }
  0x1a   : > { %v388_v36 = vpack.c.bf16 %v237_v35, %v236_v34  ;;  %v238_v37 = vsel %vm222_vm2, %v214_v24, %v230_v32  ;;  %v239_v38 = vsel %vm223_vm3, %v215_v25, %v231_v33  ;;  %v232_v39 = vmul.f32 0.2, %v216_v26 }
  0x1b   : > { %v393_v40 = vpack.c.bf16 %v239_v38, %v238_v37  ;;  %v233_v41 = vmul.f32 0.2, %v217_v27  ;;  %vm226_vm6 = vcmp.ge.f32.partialorder %v218_v28, 0.0  ;;  %vm227_vm7 = vcmp.ge.f32.partialorder %v219_v29, 0.0 }
  0x1c   : > { %389 = vst [vmem:[%s172_s25] sm:$0xff] %v388_v36   ;;  %v240_v42 = vsel %vm224_vm4, %v216_v26, %v232_v39  ;;  %v234_v43 = vmul.f32 0.2, %v218_v28  ;;  %v235_v44 = vmul.f32 0.2, %v219_v29 }
  0x1d   : > { %408 = vst [vmem:[%s172_s25 + $0x8] sm:$0xff] %v393_v40   ;;  %v241_v45 = vsel %vm225_vm5, %v217_v27, %v233_v41 }
  0x1e   : > { %v398_v46 = vpack.c.bf16 %v241_v45, %v240_v42  ;;  %v242_v47 = vsel %vm226_vm6, %v218_v28, %v234_v43  ;;  %v243_v48 = vsel %vm227_vm7, %v219_v29, %v235_v44 }
  0x1f   : > { %v403_v49 = vpack.c.bf16 %v243_v48, %v242_v47 }
  0x20   : > { %409 = vst [vmem:[%s172_s25 + $0x10] sm:$0xff] %v398_v46  }
  0x21   : > { %410 = vst [vmem:[%s172_s25 + $0x18] sm:$0xff] %v403_v49  }
  0x22 PF: > { %s13_s12 = sadd.s32 1, %s425_s12  }
  0x23   : > { %p10_p4 = scmp.ge.s32.totalorder %s13_s12, 4  }
  0x25   :  { %12 = sbr.rel (!%p10_p4) target bundleno = 1 (0x1), region = 62 }

</bundles_post_ra>
